<compile_context>
chip_gen: v7x
topology: tpu7x:2x2x1
jax: 0.10.0
libtpu: 0.0.40
codegen_flags: <defaults>
</compile_context>

<pallas_src>
import functools

import jax
import jax.numpy as jnp
from jax.experimental import pallas as pl
from jax.experimental.pallas import tpu as pltpu


def _round_up(x, m):
    return (x + m - 1) // m * m


def _largest_tile_divisor(total, cap, unit=128):
    """Largest multiple of `unit` that divides `total` and is <= cap."""
    m = total // unit
    qcap = max(1, min(cap // unit, m))
    for q in range(qcap, 0, -1):
        if m % q == 0:
            return unit * q
    return unit


def _physical_vmem_bytes():
    """Per-core physical VMEM; conservative 64 MiB (v7x) fallback."""
    try:
        info = pltpu.get_tpu_info()
        v = getattr(info, "vmem_capacity_bytes", None)
        if v:
            return int(v)
    except Exception:
        pass
    return 64 << 20


def _fused_bbox_head_kernel(x_ref, w_ref, b_ref, y_ref):
    """One (TM, TK) x (TK, T_OUT) MXU step, accumulated directly into y (f32)."""
    k = pl.program_id(2)

    @pl.when(k == 0)
    def _init():
        # Fold the fused bias into the accumulator init (no separate add pass).
        y_ref[...] = jnp.broadcast_to(b_ref[...], y_ref.shape)

    y_ref[...] += jnp.dot(x_ref[...], w_ref[...],
                          preferred_element_type=jnp.float32)


def fuse_bbox_head_params(params, compute_dtype=jnp.bfloat16):
    """One-time parameter prep: fuse the three heads into one lane-padded W/b.

    Returns (w_fused (D_pad, OUT_pad) compute_dtype, b_fused (1, OUT_pad) f32,
    (n_cls, n_reg, n_cnt)).
    """
    w = jnp.concatenate([params["w_cls"], params["w_reg"], params["w_cnt"]], axis=1)
    b = jnp.concatenate([params["b_cls"], params["b_reg"], params["b_cnt"]], axis=1)
    d, out_total = w.shape
    out_pad = _round_up(out_total, 128)
    d_pad = _round_up(d, 128)
    w = jnp.pad(w, ((0, d_pad - d), (0, out_pad - out_total)))
    b = jnp.pad(b, ((0, 0), (0, out_pad - out_total)))
    splits = (params["w_cls"].shape[1], params["w_reg"].shape[1],
              params["w_cnt"].shape[1])
    return w.astype(compute_dtype), b.astype(jnp.float32), splits


@functools.partial(jax.jit, static_argnames=("n_cls", "n_reg", "n_cnt"))
def bbox_head_forward(x_nchw, w_fused, b_fused, *, n_cls, n_reg, n_cnt):
    """Forward pass of BBoxHead (with_avg_pool=False, cls/reg/count heads).

    x_nchw: (N, C, H, W) RoI features (same as the PyTorch module input).
    w_fused/b_fused: from fuse_bbox_head_params (done once, outside this jit).
    Returns (cls_score, bbox_pred, count_score) in float32.
    """
    n = x_nchw.shape[0]
    x_flat = x_nchw.reshape(n, -1)              # == torch x.view(x.size(0), -1)
    d = x_flat.shape[1]
    d_pad, out_pad = w_fused.shape
    assert d <= d_pad < d + 128, "w_fused D padding inconsistent with x"
    assert n_cls + n_reg + n_cnt <= out_pad

    compute_dtype = w_fused.dtype
    itemsize = jnp.dtype(compute_dtype).itemsize
    vmem_phys = _physical_vmem_bytes()

    # ---- tiling plan ---------------------------------------------------------
    row_align = 16 if itemsize < 4 else 8       # bf16 packs 2 rows / sublane
    tm = _round_up(min(max(n, row_align), 1024), row_align)
    n_pad = _round_up(n, tm)

    # Lane-shard the fused OUT dim (for v7x's 2 TCs) only when the whole batch
    # is a single row tile; otherwise rows already provide the parallel axis.
    if vmem_phys <= (96 << 20) and out_pad % 256 == 0 and n_pad == tm:
        t_out = out_pad // 2
    else:
        t_out = out_pad

    headroom = (20 << 20) if vmem_phys <= (96 << 20) else (24 << 20)
    budget = vmem_phys - headroom

    def footprint(tm_, tk_):
        return (2 * itemsize * (tm_ * tk_ + tk_ * t_out)   # x, W double-buffered
                + 2 * 4 * tm_ * t_out                       # f32 output block
                + 2 * 4 * t_out                              # fused bias
                + (2 << 20))                                 # internal-scratch slack

    # Prefer whole-D VMEM-resident weight tile (single K step); otherwise pick
    # the largest 128-multiple divisor of d_pad that fits the VMEM budget.
    tk = d_pad
    while footprint(tm, tk) > budget:
        if tk > 128:
            tk = _largest_tile_divisor(d_pad, tk - 128)
        elif tm > row_align:
            tm = max(row_align, _round_up(tm // 2, row_align))
            n_pad = _round_up(n, tm)
        else:
            break

    # ---- pad x (zero rows/cols contribute nothing to the matmul) -------------
    x_p = x_flat.astype(compute_dtype)
    if n_pad != n or d_pad != d:
        x_p = jnp.pad(x_p, ((0, n_pad - n), (0, d_pad - d)))

    grid = (n_pad // tm, out_pad // t_out, d_pad // tk)

    fp = footprint(tm, tk)
    vmem_limit = int(max(min(budget + (4 << 20), vmem_phys - (8 << 20)), fp))

    cost = pl.CostEstimate(
        flops=2 * n_pad * d_pad * out_pad,
        transcendentals=0,
        bytes_accessed=(n_pad * d_pad * itemsize * (out_pad // t_out)   # x stream
                        + d_pad * out_pad * itemsize * (n_pad // tm)    # W stream
                        + out_pad * 4
                        + n_pad * out_pad * 4),
    )

    y_pad = pl.pallas_call(
        _fused_bbox_head_kernel,
        out_shape=jax.ShapeDtypeStruct((n_pad, out_pad), jnp.float32),
        grid_spec=pltpu.PrefetchScalarGridSpec(
            num_scalar_prefetch=0,
            grid=grid,
            in_specs=[
                pl.BlockSpec((tm, tk), lambda i, j, k: (i, k)),       # x tile
                pl.BlockSpec((tk, t_out), lambda i, j, k: (k, j)),    # fused W tile
                pl.BlockSpec((1, t_out), lambda i, j, k: (0, j)),     # fused bias
            ],
            out_specs=pl.BlockSpec((tm, t_out), lambda i, j, k: (i, j)),
        ),
        compiler_params=pltpu.CompilerParams(
            dimension_semantics=("parallel", "parallel", "arbitrary"),
            vmem_limit_bytes=vmem_limit,
        ),
        cost_estimate=cost,
    )(x_p, w_fused, b_fused)

    # ---- strip padding and split the three heads (outside the kernel) --------
    y = y_pad[:n, :n_cls + n_reg + n_cnt]
    cls_score = y[:, :n_cls]
    bbox_pred = y[:, n_cls:n_cls + n_reg]
    count_score = y[:, n_cls + n_reg:]
    return cls_score, bbox_pred, count_score


def init_params(key, in_channels, roi_feat_size, num_classes,
                reg_class_agnostic=False):
    """Mirrors BBoxHead.init_weights(): normal(0, 0.01) for fc_cls.weight,
    normal(0, 0.001) for fc_reg / fc_count, zero biases.
    Weights stored as (D, out) (transposed vs PyTorch) for y = x @ W + b."""
    d = in_channels * roi_feat_size * roi_feat_size
    out_reg = 4 if reg_class_agnostic else 4 * num_classes
    k1, k2, k3 = jax.random.split(key, 3)
    return {
        "w_cls": 0.01 * jax.random.normal(k1, (d, num_classes), jnp.float32),
        "b_cls": jnp.zeros((1, num_classes), jnp.float32),
        "w_reg": 0.001 * jax.random.normal(k2, (d, out_reg), jnp.float32),
        "b_reg": jnp.zeros((1, out_reg), jnp.float32),
        "w_cnt": 0.001 * jax.random.normal(k3, (d, 6), jnp.float32),
        "b_cnt": jnp.zeros((1, 6), jnp.float32),
    }


# TODO(synk): loss()/get_target()/get_det_bboxes()/Stage*Div/int2bin helpers are
# training & post-processing (NMS, binning) and are not part of forward();
# they are intentionally not translated to Pallas.

if __name__ == "__main__":
    # Small, forward-consistent shapes: N RoIs of (C, roi, roi) features.
    N = 8
    in_channels = 16
    roi_feat_size = 4
    num_classes = 8

    key = jax.random.PRNGKey(0)
    kx, kp = jax.random.split(key)
    x = jax.random.normal(kx, (N, in_channels, roi_feat_size, roi_feat_size),
                          jnp.float32)
    params = init_params(kp, in_channels, roi_feat_size, num_classes)
    n_cls, n_reg, n_cnt = num_classes, 4 * num_classes, 6

    # Plain-JAX reference of the same forward.
    x_flat = x.reshape(N, -1)
    ref_cls = x_flat @ params["w_cls"] + params["b_cls"]
    ref_reg = x_flat @ params["w_reg"] + params["b_reg"]
    ref_cnt = x_flat @ params["w_cnt"] + params["b_cnt"]

    # f32 compute path (strict check).
    w32, b32, _ = fuse_bbox_head_params(params, compute_dtype=jnp.float32)
    cls32, reg32, cnt32 = bbox_head_forward(
        x, w32, b32, n_cls=n_cls, n_reg=n_reg, n_cnt=n_cnt)
    jax.block_until_ready((cls32, reg32, cnt32))
    assert cls32.shape == (N, num_classes)
    assert reg32.shape == (N, 4 * num_classes)
    assert cnt32.shape == (N, 6)
    assert jnp.allclose(cls32, ref_cls, atol=1e-5)
    assert jnp.allclose(reg32, ref_reg, atol=1e-5)
    assert jnp.allclose(cnt32, ref_cnt, atol=1e-5)

    # bf16 default compute path (f32 accumulation) — loose tolerance.
    wbf, bbf, _ = fuse_bbox_head_params(params)          # bf16 default
    cls_b, reg_b, cnt_b = bbox_head_forward(
        x, wbf, bbf, n_cls=n_cls, n_reg=n_reg, n_cnt=n_cnt)
    jax.block_until_ready((cls_b, reg_b, cnt_b))
    assert jnp.allclose(cls_b, ref_cls, atol=3e-2, rtol=3e-2)
    assert jnp.allclose(reg_b, ref_reg, atol=3e-2, rtol=3e-2)
    assert jnp.allclose(cnt_b, ref_cnt, atol=3e-2, rtol=3e-2)

    print("KERNEL_OK")
</pallas_src>

<mosaic_0001>
module attributes {stable_mosaic.version = 11 : i64} {
  func.func @_fused_bbox_head_kernel(%arg0: i32, %arg1: i32, %arg2: i32, %arg3: memref<8x256xf32, #tpu.memory_space<vmem>>, %arg4: memref<256x128xf32, #tpu.memory_space<vmem>>, %arg5: memref<1x128xf32, #tpu.memory_space<vmem>>, %arg6: memref<8x128xf32, #tpu.memory_space<vmem>>) attributes {dimension_semantics = [#tpu.dimension_semantics<parallel>, #tpu.dimension_semantics<parallel>, #tpu.dimension_semantics<arbitrary>], iteration_bounds = array<i64: 1, 1, 1>, scalar_prefetch = 0 : i64, scratch_operands = 0 : i64, tpu.core_type = #tpu.core_type<tc>, window_params = [{transform_indices = @transform_0, window_bounds = array<i64: 8, 256>}, {transform_indices = @transform_1, window_bounds = array<i64: 256, 128>}, {transform_indices = @transform_2, window_bounds = array<i64: 1, 128>}, {transform_indices = @transform_3, window_bounds = array<i64: 8, 128>}]} {
    %c0_i32 = arith.constant 0 : i32
    %0 = arith.cmpi eq, %arg2, %c0_i32 : i32
    %1 = arith.extui %0 : i1 to i32
    %c0_i32_0 = arith.constant 0 : i32
    %2 = arith.cmpi ne, %1, %c0_i32_0 : i32
    scf.if %2 {
      %c0_8 = arith.constant 0 : index
      %c0_9 = arith.constant 0 : index
      %9 = vector.load %arg5[%c0_8, %c0_9] : memref<1x128xf32, #tpu.memory_space<vmem>>, vector<1x128xf32>
      %10 = vector.shape_cast %9 : vector<1x128xf32> to vector<1x128xf32>
      %11 = vector.broadcast %10 : vector<1x128xf32> to vector<8x128xf32>
      %c0_10 = arith.constant 0 : index
      %c0_11 = arith.constant 0 : index
      %12 = vector.load %arg6[%c0_10, %c0_11] : memref<8x128xf32, #tpu.memory_space<vmem>>, vector<8x128xf32>
      tpu.vector_store %arg6[%c0_10, %c0_11], %11 {strides = array<i32>} : memref<8x128xf32, #tpu.memory_space<vmem>>, vector<8x128xf32>,
    } else {
    }
    %c0 = arith.constant 0 : index
    %c0_1 = arith.constant 0 : index
    %3 = vector.load %arg6[%c0, %c0_1] : memref<8x128xf32, #tpu.memory_space<vmem>>, vector<8x128xf32>
    %c0_2 = arith.constant 0 : index
    %c0_3 = arith.constant 0 : index
    %4 = vector.load %arg3[%c0_2, %c0_3] : memref<8x256xf32, #tpu.memory_space<vmem>>, vector<8x256xf32>
    %c0_4 = arith.constant 0 : index
    %c0_5 = arith.constant 0 : index
    %5 = vector.load %arg4[%c0_4, %c0_5] : memref<256x128xf32, #tpu.memory_space<vmem>>, vector<256x128xf32>
    %cst = arith.constant dense<0.000000e+00> : vector<8x128xf32>
    %6 = tpu.matmul %4, %5, %cst {dimension_numbers = #tpu.dot_dimension_numbers<[1], [0], [0], [1], [0, 0, 1, 1], [], []>} : vector<8x256xf32>, vector<256x128xf32>, vector<8x128xf32> -> vector<8x128xf32>
    %7 = arith.addf %3, %6 : vector<8x128xf32>
    %c0_6 = arith.constant 0 : index
    %c0_7 = arith.constant 0 : index
    %8 = vector.load %arg6[%c0_6, %c0_7] : memref<8x128xf32, #tpu.memory_space<vmem>>, vector<8x128xf32>
    tpu.vector_store %arg6[%c0_6, %c0_7], %7 {strides = array<i32>} : memref<8x128xf32, #tpu.memory_space<vmem>>, vector<8x128xf32>,
    return
  }
  func.func @transform_0(%arg0: i32, %arg1: i32, %arg2: i32) -> (i32, i32) {
    %c0_i32 = arith.constant 0 : i32
    return %arg0, %arg2 : i32, i32
  }
  func.func @transform_1(%arg0: i32, %arg1: i32, %arg2: i32) -> (i32, i32) {
    %c0_i32 = arith.constant 0 : i32
    return %arg2, %arg1 : i32, i32
  }
  func.func @transform_2(%arg0: i32, %arg1: i32, %arg2: i32) -> (i32, i32) {
    %c0_i32 = arith.constant 0 : i32
    %c0_i32_0 = arith.constant 0 : i32
    return %c0_i32, %arg1 : i32, i32
  }
  func.func @transform_3(%arg0: i32, %arg1: i32, %arg2: i32) -> (i32, i32) {
    %c0_i32 = arith.constant 0 : i32
    return %arg0, %arg1 : i32, i32
  }
}

</mosaic_0001>

<bundles_post_ra>
// kernel: bbox_head_forward.1
= control target key start
LH: loop header
LB: loop body
LE: loop exit
PB: predicated region body
PF: predicated region fallthrough
CT: control target
= control target key end

     0   :  { %s333_s1 = inlined_call_operand.vmem [shape: f32[256,128], index: 1, kind: input, shape index: {}]   ;;  %s334_s0 = inlined_call_operand.vmem [shape: f32[8,256], index: 0, kind: input, shape index: {}]   ;;  %s335_s2 = inlined_call_operand.vmem [shape: f32[1,128], index: 2, kind: input, shape index: {}]   ;;  %s336_s3 = inlined_call_operand.vmem [shape: f32[8,128], index: 3, kind: output, shape index: {}]  }
   0x1   :  { %v45_v0 = vld [vmem:[%s333_s1 + $0x80] sm:$0xff]  ;;  %v46_v1 = vld [vmem:[%s333_s1 + $0x88] sm:$0xff]  ;;  %v47_v5 = vld [vmem:[%s333_s1 + $0x90] sm:$0xff] }
   0x2   :  { %v29_v2 = vld [vmem:[%s333_s1] sm:$0xff]  ;;  %v173_v3 = vpack.c.bf16 %v46_v1, %v45_v0  ;;  %v30_v4 = vld [vmem:[%s333_s1 + $0x8] sm:$0xff]  ;;  %v48_v6 = vld [vmem:[%s333_s1 + $0x98] sm:$0xff] }
   0x3   :  { %v175_v7 = vpack.c.bf16 %v30_v4, %v29_v2  ;;  %v177_v8 = vpack.c.bf16 %v48_v6, %v47_v5  ;;  %v31_v9 = vld [vmem:[%s333_s1 + $0x10] sm:$0xff]  ;;  %v32_v10 = vld [vmem:[%s333_s1 + $0x18] sm:$0xff]  ;;  %v49_v11 = vld [vmem:[%s333_s1 + $0xa0] sm:$0xff] }
   0x4   :  { %174 = vmatprep.subr.bf16.mxu0 %v173_v3  ;;  %v50_v12 = vld [vmem:[%s333_s1 + $0xa8] sm:$0xff]  ;;  %v179_v13 = vpack.c.bf16 %v32_v10, %v31_v9  ;;  %v33_v15 = vld [vmem:[%s333_s1 + $0x20] sm:$0xff]  ;;  %v51_v17 = vld [vmem:[%s333_s1 + $0xb0] sm:$0xff] }
   0x5   :  { %176 = vmatpush3.bf16.msra.mxu0 %v175_v7  ;;  %v181_v14 = vpack.c.bf16 %v50_v12, %v49_v11  ;;  %v34_v16 = vld [vmem:[%s333_s1 + $0x28] sm:$0xff]  ;;  %v52_v18 = vld [vmem:[%s333_s1 + $0xb8] sm:$0xff]  ;;  %v35_v21 = vld [vmem:[%s333_s1 + $0x30] sm:$0xff] }
   0x6   :  { %178 = vmatprep.subr.bf16.mxu0 %v177_v8  ;;  %v183_v19 = vpack.c.bf16 %v34_v16, %v33_v15  ;;  %v185_v20 = vpack.c.bf16 %v52_v18, %v51_v17  ;;  %v36_v22 = vld [vmem:[%s333_s1 + $0x38] sm:$0xff]  ;;  %v53_v23 = vld [vmem:[%s333_s1 + $0xc0] sm:$0xff]  ;;  %v54_v24 = vld [vmem:[%s333_s1 + $0xc8] sm:$0xff] }
   0x7   :  { %v28_v25 = vld [vmem:[%s334_s0 + $0x8] sm:$0xff]  ;;  %v187_v26 = vpack.c.bf16 %v36_v22, %v35_v21  ;;  %v189_v27 = vpack.c.bf16 %v54_v24, %v53_v23  ;;  %v37_v28 = vld [vmem:[%s333_s1 + $0x40] sm:$0xff]  ;;  %v55_v30 = vld [vmem:[%s333_s1 + $0xd0] sm:$0xff] }
   0x8   :  { %125 = vmatprep.mubr.f32.mxu0 %v28_v25  ;;  %v38_v29 = vld [vmem:[%s333_s1 + $0x48] sm:$0xff]  ;;  %v56_v31 = vld [vmem:[%s333_s1 + $0xd8] sm:$0xff]  ;;  %v39_v34 = vld [vmem:[%s333_s1 + $0x50] sm:$0xff] }
   0x9   :  { %180 = vmatpush3.bf16.msra.mxu0 %v179_v13  ;;  %v191_v32 = vpack.c.bf16 %v38_v29, %v37_v28  ;;  %v193_v33 = vpack.c.bf16 %v56_v31, %v55_v30  ;;  %v40_v35 = vld [vmem:[%s333_s1 + $0x58] sm:$0xff]  ;;  %v57_v36 = vld [vmem:[%s333_s1 + $0xe0] sm:$0xff]  ;;  %v58_v37 = vld [vmem:[%s333_s1 + $0xe8] sm:$0xff] }
   0xa   :  { %182 = vmatprep.subr.bf16.mxu0 %v181_v14  ;;  %v195_v38 = vpack.c.bf16 %v40_v35, %v39_v34  ;;  %v197_v39 = vpack.c.bf16 %v58_v37, %v57_v36  ;;  %v41_v40 = vld [vmem:[%s333_s1 + $0x60] sm:$0xff]  ;;  %v42_v41 = vld [vmem:[%s333_s1 + $0x68] sm:$0xff]  ;;  %v59_v42 = vld [vmem:[%s333_s1 + $0xf0] sm:$0xff] }
   0xb   :  { %v60_v43 = vld [vmem:[%s333_s1 + $0xf8] sm:$0xff]  ;;  %v199_v44 = vpack.c.bf16 %v42_v41, %v41_v40  ;;  %v43_v46 = vld [vmem:[%s333_s1 + $0x70] sm:$0xff]  ;;  %v27_v49 = vld [vmem:[%s334_s0] sm:$0xff] }
   0xc   :  { %v201_v45 = vpack.c.bf16 %v60_v43, %v59_v42  ;;  %v44_v47 = vld [vmem:[%s333_s1 + $0x78] sm:$0xff]  ;;  %v137_v51 = vld [vmem:[%s335_s2] ss:$0 sm:$0xff] }
   0xd   :  { %184 = vmatpush3.bf16.msra.mxu0 %v183_v19  ;;  %v203_v48 = vpack.c.bf16 %v44_v47, %v43_v46 }
   0xe   :  { %186 = vmatprep.subr.bf16.mxu0 %v185_v20 }
  0x11   :  { %188 = vmatpush3.bf16.msra.mxu0 %v187_v26 }
  0x12   :  { %190 = vmatprep.subr.bf16.mxu0 %v189_v27 }
  0x15   :  { %192 = vmatpush3.bf16.msra.mxu0 %v191_v32 }
  0x16   :  { %194 = vmatprep.subr.bf16.mxu0 %v193_v33 }
  0x19   :  { %196 = vmatpush3.bf16.msra.mxu0 %v195_v38 }
  0x1a   :  { %198 = vmatprep.subr.bf16.mxu0 %v197_v39 }
  0x1d   :  { %200 = vmatpush3.bf16.msra.mxu0 %v199_v44 }
  0x1e   :  { %202 = vmatprep.subr.bf16.mxu0 %v201_v45 }
  0x21   :  { %204 = vmatpush3.bf16.msra.mxu0 %v203_v48 }
  0x24   :  { %126 = vmatmul.mubr.f32.vlgmr.msra.gmra.mrb[0].mxu0 %v27_v49 }
  0xf7   :  { %v170_v50 = vpop.f32.mrb[0].mxu0 }
  0xf8   :  { %v171_v52 = vpop.f32.mrb[1].mxu0 }
  0xf9   :  { %v172_v53 = vadd.f32 %v171_v52, %v170_v50 }
  0xfb   :  { %v131_v54 = vadd.f32 %v172_v53, %v137_v51 }
  0xfd   :  { %132 = vst [vmem:[%s336_s3] sm:$0xff] %v131_v54 }

</bundles_post_ra>
